<compile_context>
chip_gen: v5e
topology: v5e:2x2
jax: 0.10.0
libtpu: 0.0.40
codegen_flags: <defaults>
</compile_context>

<pallas_src>
import jax
import jax.numpy as jnp
from jax.experimental import pallas as pl
from jax.experimental.pallas import tpu as pltpu


def _round_up(x: int, m: int) -> int:
    return ((x + m - 1) // m) * m


def _one_hot_kernel(ids_ref, out_ref):
    # ids_ref: (TB, 1)        int32 task ids for this batch tile
    # out_ref: (TB, n_skills) one-hot tile, stored directly in the consumer dtype
    tb, n_skills = out_ref.shape
    skill = jax.lax.broadcasted_iota(jnp.int32, (tb, n_skills), 1)  # lane iota
    # VPU compare; (TB, 1) ids broadcast along lanes; negative/OOB ids -> all-zero row.
    out_ref[...] = (skill == ids_ref[...]).astype(out_ref.dtype)


def _vmem_budget_bytes() -> int:
    # Size tiling against the smallest generation (v7x: 64 MiB physical VMEM,
    # 32 MiB scoped default) so the same kernel is safe on v5e / v6e / v7x.
    cap = 64 * 1024 * 1024
    try:
        cap = int(getattr(pltpu.get_tpu_info(), "vmem_capacity_bytes", cap))
    except Exception:
        pass
    return min(cap // 4, 24 * 1024 * 1024)


def private_selector_forward(task_ids, n_skills, *, dtype=jnp.int8,
                             vmem_budget_bytes=None):
    """JAX/Pallas equivalent of PrivateSelector.forward.

    task_ids : int array of shape [B]
    returns  : array of shape [B, 1, n_skills] with values {0, 1} (default int8;
               pass dtype=jnp.bfloat16 / jnp.float32 for float consumers).
    """
    B = int(task_ids.shape[0])
    out_itemsize = jnp.dtype(dtype).itemsize
    budget = _vmem_budget_bytes() if vmem_budget_bytes is None else int(vmem_budget_bytes)

    # Per-batch-row VMEM footprint, accounting for layout padding:
    #   ids column (TB, 1) int32 pads its lane axis to 128 in VMEM,
    #   each output row pads its lane axis to a multiple of 128.
    ids_row_bytes = 128 * 4
    out_row_bytes = _round_up(n_skills, 128) * out_itemsize
    per_row_bytes = ids_row_bytes + out_row_bytes

    cost = pl.CostEstimate(flops=0, transcendentals=0,
                           bytes_accessed=B * 4 + B * n_skills * out_itemsize)

    single_footprint = _round_up(B, 32) * per_row_bytes
    if single_footprint <= budget:
        # ---- Common case: single invocation, whole problem in VMEM, no grid,
        # ---- no batch padding, no wrapper slice/transpose/cast.
        vmem_limit = int(min(max(single_footprint + 4 * 1024 * 1024,
                                 8 * 1024 * 1024), 48 * 1024 * 1024))
        ids_col = task_ids.astype(jnp.int32)[:, None]                 # (B, 1)
        out2d = pl.pallas_call(
            _one_hot_kernel,
            out_shape=jax.ShapeDtypeStruct((B, n_skills), dtype),
            compiler_params=pltpu.CompilerParams(vmem_limit_bytes=vmem_limit),
            cost_estimate=cost,
        )(ids_col)                                                    # (B, n_skills)
        return out2d.reshape(B, 1, n_skills)                          # free reshape

    # ---- Large-slab fallback: tile the batch (sublane) axis. ----
    max_rows = max(budget // (2 * per_row_bytes), 8)   # double-buffered footprint
    tb = min(_round_up(B, 8), (max_rows // 8) * 8, 32768)
    tb = max(tb, 8)
    b_pad = _round_up(B, tb)
    grid = (b_pad // tb,)

    # Pad with task_id = -1 so padded rows are all-zero (never one-hot at skill 0);
    # the padded slab is therefore safe to hand to a fused consumer directly.
    ids_col = jnp.pad(task_ids.astype(jnp.int32), (0, b_pad - B),
                      constant_values=-1)[:, None]                    # (b_pad, 1)

    vmem_limit = int(min(2 * tb * per_row_bytes + 4 * 1024 * 1024,
                         48 * 1024 * 1024))
    out2d = pl.pallas_call(
        _one_hot_kernel,
        out_shape=jax.ShapeDtypeStruct((b_pad, n_skills), dtype),
        grid=grid,
        in_specs=[pl.BlockSpec((tb, 1), lambda i: (i, 0))],
        out_specs=pl.BlockSpec((tb, n_skills), lambda i: (i, 0)),
        compiler_params=pltpu.CompilerParams(
            dimension_semantics=("parallel",),
            vmem_limit_bytes=vmem_limit),
        cost_estimate=cost,
    )(ids_col)                                                        # (b_pad, n_skills)
    return out2d[:B].reshape(B, 1, n_skills)


if __name__ == "__main__":
    key = jax.random.PRNGKey(0)

    # 1) Small config matching the module: n_skills experts, tiny batch.
    #    Exercises the single-invocation (no-grid) direct-layout path.
    n_skills, batch = 8, 2
    task_ids = jax.random.randint(key, (batch,), 0, n_skills, dtype=jnp.int32)
    out = jax.block_until_ready(private_selector_forward(task_ids, n_skills))
    ref = jax.nn.one_hot(task_ids, n_skills, dtype=out.dtype)[:, None, :]
    assert out.shape == (batch, 1, n_skills), out.shape
    assert bool(jnp.all(out == ref)), "mismatch vs reference one-hot (small case)"

    # 2) Lane-dense case (n_skills >= 128), still single invocation.
    n_skills1, batch1 = 256, 16
    task_ids1 = jax.random.randint(jax.random.PRNGKey(2), (batch1,), 0, n_skills1,
                                   dtype=jnp.int32)
    out1 = jax.block_until_ready(private_selector_forward(task_ids1, n_skills1))
    ref1 = jax.nn.one_hot(task_ids1, n_skills1, dtype=out1.dtype)[:, None, :]
    assert out1.shape == (batch1, 1, n_skills1), out1.shape
    assert bool(jnp.all(out1 == ref1)), "mismatch vs reference one-hot (lane-dense case)"

    # 3) Force the batch-tiled path (tiny VMEM budget) + non-int8 dtype emitted
    #    directly from the kernel; exercises padding with -1 and the [:B] slice.
    n_skills2, batch2 = 64, 2500
    task_ids2 = jax.random.randint(jax.random.PRNGKey(1), (batch2,), 0, n_skills2,
                                   dtype=jnp.int32)
    out2 = jax.block_until_ready(
        private_selector_forward(task_ids2, n_skills2, dtype=jnp.bfloat16,
                                 vmem_budget_bytes=256 * 1024))
    ref2 = jax.nn.one_hot(task_ids2, n_skills2, dtype=jnp.bfloat16)[:, None, :]
    assert out2.shape == (batch2, 1, n_skills2), out2.shape
    assert bool(jnp.all(out2 == ref2)), "mismatch vs reference one-hot (tiled case)"

    print("KERNEL_OK")
</pallas_src>

<mosaic_0001>
module attributes {stable_mosaic.version = 11 : i64} {
  func.func @_one_hot_kernel(%arg0: memref<2x1xi32, #tpu.memory_space<vmem>>, %arg1: memref<2x8xi8, #tpu.memory_space<vmem>>) attributes {dimension_semantics = [], scalar_prefetch = 0 : i64, scratch_operands = 0 : i64, tpu.core_type = #tpu.core_type<tc>} {
    %0 = tpu.iota {dimensions = array<i32: 1>} : vector<2x8xi32>
    %c0 = arith.constant 0 : index
    %c0_0 = arith.constant 0 : index
    %1 = vector.load %arg0[%c0, %c0_0] : memref<2x1xi32, #tpu.memory_space<vmem>>, vector<2x1xi32>
    %2 = vector.broadcast %1 : vector<2x1xi32> to vector<2x8xi32>
    %3 = arith.cmpi eq, %0, %2 : vector<2x8xi32>
    %4 = arith.extui %3 : vector<2x8xi1> to vector<2x8xi8>
    %c0_1 = arith.constant 0 : index
    %c0_2 = arith.constant 0 : index
    %5 = vector.load %arg1[%c0_1, %c0_2] : memref<2x8xi8, #tpu.memory_space<vmem>>, vector<2x8xi8>
    tpu.vector_store %arg1[%c0_1, %c0_2], %4 {strides = array<i32>} : memref<2x8xi8, #tpu.memory_space<vmem>>, vector<2x8xi8>,
    return
  }
}

</mosaic_0001>

<bundles_post_ra>
// kernel: tpu_custom_call.1
= control target key start
LH: loop header
LB: loop body
LE: loop exit
PB: predicated region body
PF: predicated region fallthrough
CT: control target
= control target key end

     0   :  { %s93_s0 = inlined_call_operand.vmem [shape: s32[2,1], index: 0, kind: input, shape index: {}]   ;;  %s94_s1 = inlined_call_operand.hbm [shape: s8[2,8], index: 1, kind: output, shape index: {}]  }
   0x1   :  { %v13_v0 = vld [vmem:[%s93_s0] sm:$0x3] }
   0x2   :  { %6 = vsyncpa [#allocation3], 0  ;;  %v75_v1 = vmov 0   ;;  %v11_v2 = vlaneseq  ;;  %vm24_vm2 = vcmask 57344   ;;  %vm25_vm3 = vsmask.f32 256 }
   0x3   :  { %48 = vset.pattern.permute.xlu0 %v75_v1  ;;  %s76_s8 = smov [#allocation2]   ;;  %s37_s12 = sshll.u32 %s94_s1, 4  ;;  %vm26_vm4 = vmand %vm24_vm2, %vm25_vm3  ;;  %v27_v7 = vld [vmem:[#allocation2] sm:$0x1]  ;;  %s38_s12 = int_to_ptr.hbm [resolvable:$true] %s37_s12 }
   0x4   :  { %15 = vperm.xlu0 %48, %v13_v0   ;;  %v12_v3 = vand.u32 127, %v11_v2  ;;  %s35_s9 = sshll.u32 %s76_s8, 4  ;;  %s36_s9 = int_to_ptr.vmem [resolvable:$true] %s35_s9 }
  0x76   :  { %v16_v4 = vpop.permute.xlu0 %15 }
  0x77   :  { %vm17_vm0 = vcmp.eq.s32.totalorder %v12_v3, %v16_v4 }
  0x78   :  { %vm18_vm1 = vmpackc.low %vm17_vm0, %vm17_vm0 }
  0x79   :  { %v19_v5 = vsel %vm18_vm1, 16711935, %v75_v1 }
  0x7a   :  { %v21_v6 = vpack.c.b8 %v19_v5, %v19_v5 }
  0x7c   :  { %vm22_vm5 = vnez %v21_v6 }
  0x7d   :  { %v23_v8 = vsel %vm22_vm5, 16843009, %v75_v1 }
  0x7e   :  { %v28_v9 = vsel %vm26_vm4, %v23_v8, %v27_v7 }
  0x7f   :  { %29 = vst [vmem:[#allocation2] sm:$0x1] %v28_v9 }
  0x80   :  { %40 = dma.vmem_to_hbm [thread:$0]  %s36_s9, 16, %s38_s12, [#allocation3]  }
  0x81   :  { %73 = dma.done.wait [#allocation3], 16  }
  0x82   :  { %74 = vsyncadd [#allocation3], 4294967280 }
  0x83   :  { %45 = vsyncpa [#allocation3], 1 }

</bundles_post_ra>
